<compile_context>
chip_gen: v7x
topology: tpu7x:2x2x1
jax: 0.10.0
libtpu: 0.0.40
codegen_flags: <defaults>
</compile_context>

<pallas_src>
import math

import jax
import jax.numpy as jnp
from jax import lax
from jax.experimental import pallas as pl
from jax.experimental.pallas import tpu as pltpu

_INV_SQRT2 = 1.0 / math.sqrt(2.0)
_NB_MAX = 16  # max whole batches per grid step (bounds the static in-kernel unroll)


def _ceil_to(x, m):
    return -(-x // m) * m


def _make_fused_kernel(layers, nb):
    """Kernel refs: [x0, low_1..low_L, (w1, b1, w2, b2) * L, out_0..out_L].

    Activations are read in the natural (nb, C, T) layout; outputs are written in
    the module's (nb, T, C) layout (the permute(0, 2, 1) happens in-kernel on the XLU).
    """

    def kernel(*refs):
        x0_ref = refs[0]
        low_refs = refs[1:1 + layers]
        w_refs = refs[1 + layers:1 + 5 * layers]
        out_refs = refs[1 + 5 * layers:]

        # Hoist the (tiny, VMEM-resident) weight loads out of the batch loop.
        ws = []
        for i in range(layers):
            ws.append(tuple(w_refs[4 * i + k][...].astype(jnp.float32) for k in range(4)))

        for b in range(nb):  # static unroll; nb is capped at _NB_MAX
            h = x0_ref[b].astype(jnp.float32)                    # (C, T0)
            out_refs[0][b] = h.T.astype(out_refs[0].dtype)       # level-0 output (T0, C)
            for i in range(layers):
                w1, b1, w2, b2 = ws[i]   # (T_in,T_out), (1,T_out), (T_out,T_out), (1,T_out)
                z = jnp.dot(h, w1, preferred_element_type=jnp.float32) + b1
                # exact (erf-based) GELU, matching torch.nn.GELU() default
                z = 0.5 * z * (1.0 + lax.erf(z * _INV_SQRT2))
                y = jnp.dot(z, w2, preferred_element_type=jnp.float32) + b2
                h = low_refs[i][b].astype(jnp.float32) + y       # (C, T_{i+1})
                out_refs[i + 1][b] = h.T.astype(out_refs[i + 1].dtype)

    return kernel


def _block_vmem_bytes(nb, C, t_sizes, itemsize):
    """Padded-VMEM bytes of one grid step's activation blocks (inputs + outputs)."""
    total = 0
    for t in t_sizes:
        total += nb * _ceil_to(C, 8) * _ceil_to(t, 128)   # input  block (nb, C, T)
        total += nb * _ceil_to(t, 8) * _ceil_to(C, 128)   # output block (nb, T, C)
    return total * itemsize


def _weight_vmem_bytes(t_sizes, itemsize):
    total = 0
    for l in range(len(t_sizes) - 1):
        t_in, t_out = t_sizes[l], t_sizes[l + 1]
        total += _ceil_to(t_in, 8) * _ceil_to(t_out, 128)     # w1
        total += _ceil_to(t_out, 8) * _ceil_to(t_out, 128)    # w2
        total += 2 * 8 * _ceil_to(t_out, 128)                 # b1, b2
    return total * itemsize


def _vmem_budget_bytes():
    try:
        cap = int(getattr(pltpu.get_tpu_info(), "vmem_capacity_bytes"))
    except Exception:
        cap = 64 << 20  # v7x per-TC capacity — the smallest current generation
    # ~25% headroom for compiler-internal scratch; never ask for more than ~100 MiB
    return min(cap * 3 // 4, 100 << 20)


def _choose_nb(B, C, t_sizes, itemsize, budget):
    """Largest divisor of B (<= _NB_MAX) whose double-buffered blocks fit VMEM,
    then shrunk so the grid has >= 2 steps whenever B >= 2 (v7x megacore)."""
    w_bytes = _weight_vmem_bytes(t_sizes, itemsize)
    avail = max(budget - 2 * w_bytes - (4 << 20), 1 << 20)
    nb = 1
    for cand in range(min(_NB_MAX, B), 0, -1):
        if B % cand == 0 and 2 * _block_vmem_bytes(cand, C, t_sizes, itemsize) <= avail:
            nb = cand
            break
    while nb > 1 and B // nb < 2:
        nb -= 1
        while nb > 1 and B % nb != 0:
            nb -= 1
    return max(nb, 1)


def multi_scale_season_mix(season_list, params):
    """Fused bottom-up season mixing.

    season_list[i]: (B, C, T_i) in the natural TimeMixer layout.
    params[i]: (w1 (T_i, T_{i+1}), b1 (1, T_{i+1}), w2 (T_{i+1}, T_{i+1}), b2 (1, T_{i+1}))
               i.e. torch Linear weights pre-transposed to (in_features, out_features).
    Returns [out_0, ..., out_L] with out_i: (B, T_i, C)  (== PyTorch .permute(0, 2, 1)).
    """
    layers = len(params)
    assert len(season_list) == layers + 1
    B, C, _ = season_list[0].shape
    t_sizes = [int(s.shape[2]) for s in season_list]
    dtype = season_list[0].dtype
    itemsize = jnp.dtype(dtype).itemsize

    budget = _vmem_budget_bytes()
    # TODO(synk): if a single batch's (C x sum(T)) working set ever exceeds the VMEM
    # budget, an additional channel tile would be needed; not required at these sizes.
    nb = _choose_nb(B, C, t_sizes, itemsize, budget)
    grid = (B // nb,)

    # --- BlockSpecs -----------------------------------------------------------
    in_specs = [pl.BlockSpec((nb, C, t_sizes[0]), lambda i: (i, 0, 0))]          # x0
    for lvl in range(1, layers + 1):                                             # lows
        in_specs.append(pl.BlockSpec((nb, C, t_sizes[lvl]), lambda i: (i, 0, 0)))
    flat_w = []
    for lvl, (w1, b1, w2, b2) in enumerate(params):
        t_in, t_out = t_sizes[lvl], t_sizes[lvl + 1]
        # Constant index_map => weight DMA issued once, stays resident in VMEM.
        in_specs += [
            pl.BlockSpec((t_in, t_out), lambda i: (0, 0)),
            pl.BlockSpec((1, t_out), lambda i: (0, 0)),
            pl.BlockSpec((t_out, t_out), lambda i: (0, 0)),
            pl.BlockSpec((1, t_out), lambda i: (0, 0)),
        ]
        flat_w += [w1, b1, w2, b2]
    out_specs = tuple(
        pl.BlockSpec((nb, t_sizes[lvl], C), lambda i: (i, 0, 0))
        for lvl in range(layers + 1)
    )
    out_shape = tuple(
        jax.ShapeDtypeStruct((B, t_sizes[lvl], C), dtype) for lvl in range(layers + 1)
    )

    # --- VMEM limit & cost estimate -------------------------------------------
    est = (2 * _block_vmem_bytes(nb, C, t_sizes, itemsize)
           + 2 * _weight_vmem_bytes(t_sizes, itemsize))
    vmem_limit = int(min(max(est + (4 << 20), 16 << 20), budget))

    flops = 2 * B * C * sum(
        t_sizes[l + 1] * t_sizes[l] + t_sizes[l + 1] * t_sizes[l + 1] for l in range(layers))
    transcendentals = B * C * sum(t_sizes[1:])
    weight_hbm = sum(
        t_sizes[l] * t_sizes[l + 1] + t_sizes[l + 1] ** 2 + 2 * t_sizes[l + 1]
        for l in range(layers))
    bytes_accessed = itemsize * (2 * B * C * sum(t_sizes) + weight_hbm)

    outs = pl.pallas_call(
        _make_fused_kernel(layers, nb),
        grid=grid,
        in_specs=in_specs,
        out_specs=out_specs,
        out_shape=out_shape,
        compiler_params=pltpu.CompilerParams(
            dimension_semantics=("parallel",),   # shard batch tiles across TCs (megacore)
            vmem_limit_bytes=vmem_limit,
        ),
        cost_estimate=pl.CostEstimate(
            flops=flops, transcendentals=transcendentals, bytes_accessed=bytes_accessed),
    )(season_list[0], *season_list[1:], *flat_w)
    return list(outs)


class MultiScaleSeasonMixingPallas:
    """Bottom-up mixing of season patterns (TimeMixer.MultiScaleSeasonMixing), Pallas-backed."""

    def __init__(self, seq_len, down_sampling_window, down_sampling_layers, key):
        self.params = []
        for i in range(down_sampling_layers):
            t_in = seq_len // down_sampling_window ** i
            t_out = seq_len // down_sampling_window ** (i + 1)
            key, k1, k2, k3, k4 = jax.random.split(key, 5)
            # torch.nn.Linear default init U[-1/sqrt(fan_in), +1/sqrt(fan_in)]; weights
            # stored pre-transposed to (in_features, out_features) so the kernel does x @ w.
            lim1 = 1.0 / math.sqrt(t_in)
            w1 = jax.random.uniform(k1, (t_in, t_out), jnp.float32, -lim1, lim1)
            b1 = jax.random.uniform(k2, (1, t_out), jnp.float32, -lim1, lim1)
            lim2 = 1.0 / math.sqrt(t_out)
            w2 = jax.random.uniform(k3, (t_out, t_out), jnp.float32, -lim2, lim2)
            b2 = jax.random.uniform(k4, (1, t_out), jnp.float32, -lim2, lim2)
            self.params.append((w1, b1, w2, b2))

    def __call__(self, season_list):
        return multi_scale_season_mix(season_list, self.params)

    # pure-JAX reference (same math, no Pallas) for correctness checking
    def reference(self, season_list):
        out_high = season_list[0]
        out_low = season_list[1]
        outs = [jnp.transpose(out_high, (0, 2, 1))]
        n = len(season_list)
        for i in range(n - 1):
            w1, b1, w2, b2 = self.params[i]
            h = jnp.einsum('bct,to->bco', out_high, w1) + b1
            h = 0.5 * h * (1.0 + lax.erf(h * _INV_SQRT2))
            res = jnp.einsum('bco,op->bcp', h, w2) + b2
            out_low = out_low + res
            out_high = out_low
            if i + 2 <= n - 1:
                out_low = season_list[i + 2]
            outs.append(jnp.transpose(out_high, (0, 2, 1)))
        return outs


if __name__ == "__main__":
    # TimeMixer config: seq_len=16, down_sampling_window=2, down_sampling_layers=2
    # -> season_list has down_sampling_layers + 1 = 3 scales with T = 16, 8, 4.
    seq_len, window, layers = 16, 2, 2

    key = jax.random.PRNGKey(0)
    key, kp = jax.random.split(key)
    module = MultiScaleSeasonMixingPallas(seq_len, window, layers, kp)

    def make_inputs(key, B, C):
        season_list = []
        for i in range(layers + 1):
            key, kx = jax.random.split(key)
            t_i = seq_len // window ** i
            season_list.append(jax.random.normal(kx, (B, C, t_i), jnp.float32))
        return key, season_list

    # 1) small shapes (B=2, C=8): grid of 2 single-batch tiles (both v7x TCs busy).
    key, season_list = make_inputs(key, 2, 8)
    outs = [jax.block_until_ready(o) for o in module(season_list)]
    refs = module.reference(season_list)
    for o, r in zip(outs, refs):
        assert o.shape == r.shape, (o.shape, r.shape)
        assert jnp.allclose(o, r, atol=1e-5, rtol=1e-5)

    # 2) larger B*C (B=4, C=300): multi-batch tiles + lane-unaligned channel count.
    key, season_list2 = make_inputs(key, 4, 300)
    outs2 = [jax.block_until_ready(o) for o in module(season_list2)]
    refs2 = module.reference(season_list2)
    for o, r in zip(outs2, refs2):
        assert o.shape == r.shape, (o.shape, r.shape)
        assert jnp.allclose(o, r, atol=1e-5, rtol=1e-5)

    print("KERNEL_OK")
</pallas_src>

<mosaic_0001>
module attributes {stable_mosaic.version = 11 : i64} {
  func.func @kernel(%arg0: i32, %arg1: memref<1x8x16xf32, #tpu.memory_space<vmem>>, %arg2: memref<1x8x8xf32, #tpu.memory_space<vmem>>, %arg3: memref<1x8x4xf32, #tpu.memory_space<vmem>>, %arg4: memref<16x8xf32, #tpu.memory_space<vmem>>, %arg5: memref<1x8xf32, #tpu.memory_space<vmem>>, %arg6: memref<8x8xf32, #tpu.memory_space<vmem>>, %arg7: memref<1x8xf32, #tpu.memory_space<vmem>>, %arg8: memref<8x4xf32, #tpu.memory_space<vmem>>, %arg9: memref<1x4xf32, #tpu.memory_space<vmem>>, %arg10: memref<4x4xf32, #tpu.memory_space<vmem>>, %arg11: memref<1x4xf32, #tpu.memory_space<vmem>>, %arg12: memref<1x16x8xf32, #tpu.memory_space<vmem>>, %arg13: memref<1x8x8xf32, #tpu.memory_space<vmem>>, %arg14: memref<1x4x8xf32, #tpu.memory_space<vmem>>) attributes {dimension_semantics = [#tpu.dimension_semantics<parallel>], iteration_bounds = array<i64: 2>, scalar_prefetch = 0 : i64, scratch_operands = 0 : i64, tpu.core_type = #tpu.core_type<tc>, window_params = [{transform_indices = @transform_0, window_bounds = array<i64: 1, 8, 16>}, {transform_indices = @transform_1, window_bounds = array<i64: 1, 8, 8>}, {transform_indices = @transform_2, window_bounds = array<i64: 1, 8, 4>}, {pipeline_mode = #tpu.pipeline_mode<synchronous>, transform_indices = @transform_3, window_bounds = array<i64: 16, 8>}, {pipeline_mode = #tpu.pipeline_mode<synchronous>, transform_indices = @transform_4, window_bounds = array<i64: 1, 8>}, {pipeline_mode = #tpu.pipeline_mode<synchronous>, transform_indices = @transform_5, window_bounds = array<i64: 8, 8>}, {pipeline_mode = #tpu.pipeline_mode<synchronous>, transform_indices = @transform_6, window_bounds = array<i64: 1, 8>}, {pipeline_mode = #tpu.pipeline_mode<synchronous>, transform_indices = @transform_7, window_bounds = array<i64: 8, 4>}, {pipeline_mode = #tpu.pipeline_mode<synchronous>, transform_indices = @transform_8, window_bounds = array<i64: 1, 4>}, {pipeline_mode = #tpu.pipeline_mode<synchronous>, transform_indices = @transform_9, window_bounds = array<i64: 4, 4>}, {pipeline_mode = #tpu.pipeline_mode<synchronous>, transform_indices = @transform_10, window_bounds = array<i64: 1, 4>}, {transform_indices = @transform_11, window_bounds = array<i64: 1, 16, 8>}, {transform_indices = @transform_12, window_bounds = array<i64: 1, 8, 8>}, {transform_indices = @transform_13, window_bounds = array<i64: 1, 4, 8>}]} {
    %c0 = arith.constant 0 : index
    %c0_0 = arith.constant 0 : index
    %0 = vector.load %arg4[%c0, %c0_0] : memref<16x8xf32, #tpu.memory_space<vmem>>, vector<16x8xf32>
    %c0_1 = arith.constant 0 : index
    %c0_2 = arith.constant 0 : index
    %1 = vector.load %arg5[%c0_1, %c0_2] : memref<1x8xf32, #tpu.memory_space<vmem>>, vector<1x8xf32>
    %c0_3 = arith.constant 0 : index
    %c0_4 = arith.constant 0 : index
    %2 = vector.load %arg6[%c0_3, %c0_4] : memref<8x8xf32, #tpu.memory_space<vmem>>, vector<8x8xf32>
    %c0_5 = arith.constant 0 : index
    %c0_6 = arith.constant 0 : index
    %3 = vector.load %arg7[%c0_5, %c0_6] : memref<1x8xf32, #tpu.memory_space<vmem>>, vector<1x8xf32>
    %c0_7 = arith.constant 0 : index
    %c0_8 = arith.constant 0 : index
    %4 = vector.load %arg8[%c0_7, %c0_8] : memref<8x4xf32, #tpu.memory_space<vmem>>, vector<8x4xf32>
    %c0_9 = arith.constant 0 : index
    %c0_10 = arith.constant 0 : index
    %5 = vector.load %arg9[%c0_9, %c0_10] : memref<1x4xf32, #tpu.memory_space<vmem>>, vector<1x4xf32>
    %c0_11 = arith.constant 0 : index
    %c0_12 = arith.constant 0 : index
    %6 = vector.load %arg10[%c0_11, %c0_12] : memref<4x4xf32, #tpu.memory_space<vmem>>, vector<4x4xf32>
    %c0_13 = arith.constant 0 : index
    %c0_14 = arith.constant 0 : index
    %7 = vector.load %arg11[%c0_13, %c0_14] : memref<1x4xf32, #tpu.memory_space<vmem>>, vector<1x4xf32>
    %c0_15 = arith.constant 0 : index
    %c0_16 = arith.constant 0 : index
    %c0_17 = arith.constant 0 : index
    %8 = vector.load %arg1[%c0_15, %c0_16, %c0_17] : memref<1x8x16xf32, #tpu.memory_space<vmem>>, vector<1x8x16xf32>
    %9 = vector.shape_cast %8 : vector<1x8x16xf32> to vector<8x16xf32>
    %10 = tpu.transpose %9, [1, 0] : vector<8x16xf32> -> vector<16x8xf32>
    %c0_18 = arith.constant 0 : index
    %c0_19 = arith.constant 0 : index
    %c0_20 = arith.constant 0 : index
    %11 = vector.load %arg12[%c0_18, %c0_19, %c0_20] : memref<1x16x8xf32, #tpu.memory_space<vmem>>, vector<1x16x8xf32>
    %12 = vector.shape_cast %11 : vector<1x16x8xf32> to vector<16x8xf32>
    %13 = vector.shape_cast %10 : vector<16x8xf32> to vector<1x16x8xf32>
    tpu.vector_store %arg12[%c0_18, %c0_19, %c0_20], %13 {strides = array<i32>} : memref<1x16x8xf32, #tpu.memory_space<vmem>>, vector<1x16x8xf32>,
    %cst = arith.constant dense<0.000000e+00> : vector<8x8xf32>
    %14 = tpu.matmul %9, %0, %cst {dimension_numbers = #tpu.dot_dimension_numbers<[1], [0], [0], [1], [0, 0, 1, 1], [], []>} : vector<8x16xf32>, vector<16x8xf32>, vector<8x8xf32> -> vector<8x8xf32>
    %15 = vector.broadcast %1 : vector<1x8xf32> to vector<8x8xf32>
    %16 = arith.addf %14, %15 : vector<8x8xf32>
    %cst_21 = arith.constant 5.000000e-01 : f32
    %17 = vector.broadcast %cst_21 : f32 to vector<8x8xf32>
    %18 = arith.mulf %17, %16 : vector<8x8xf32>
    %cst_22 = arith.constant 0.707106769 : f32
    %19 = vector.broadcast %cst_22 : f32 to vector<8x8xf32>
    %20 = arith.mulf %16, %19 : vector<8x8xf32>
    %21 = math.erf %20 : vector<8x8xf32>
    %cst_23 = arith.constant 1.000000e+00 : f32
    %22 = vector.broadcast %cst_23 : f32 to vector<8x8xf32>
    %23 = arith.addf %22, %21 : vector<8x8xf32>
    %24 = arith.mulf %18, %23 : vector<8x8xf32>
    %cst_24 = arith.constant dense<0.000000e+00> : vector<8x8xf32>
    %25 = tpu.matmul %24, %2, %cst_24 {dimension_numbers = #tpu.dot_dimension_numbers<[1], [0], [0], [1], [0, 0, 1, 1], [], []>} : vector<8x8xf32>, vector<8x8xf32>, vector<8x8xf32> -> vector<8x8xf32>
    %26 = vector.broadcast %3 : vector<1x8xf32> to vector<8x8xf32>
    %27 = arith.addf %25, %26 : vector<8x8xf32>
    %c0_25 = arith.constant 0 : index
    %c0_26 = arith.constant 0 : index
    %c0_27 = arith.constant 0 : index
    %28 = vector.load %arg2[%c0_25, %c0_26, %c0_27] : memref<1x8x8xf32, #tpu.memory_space<vmem>>, vector<1x8x8xf32>
    %29 = vector.shape_cast %28 : vector<1x8x8xf32> to vector<8x8xf32>
    %30 = arith.addf %29, %27 : vector<8x8xf32>
    %31 = tpu.transpose %30, [1, 0] : vector<8x8xf32> -> vector<8x8xf32>
    %c0_28 = arith.constant 0 : index
    %c0_29 = arith.constant 0 : index
    %c0_30 = arith.constant 0 : index
    %32 = vector.load %arg13[%c0_28, %c0_29, %c0_30] : memref<1x8x8xf32, #tpu.memory_space<vmem>>, vector<1x8x8xf32>
    %33 = vector.shape_cast %32 : vector<1x8x8xf32> to vector<8x8xf32>
    %34 = vector.shape_cast %31 : vector<8x8xf32> to vector<1x8x8xf32>
    tpu.vector_store %arg13[%c0_28, %c0_29, %c0_30], %34 {strides = array<i32>} : memref<1x8x8xf32, #tpu.memory_space<vmem>>, vector<1x8x8xf32>,
    %cst_31 = arith.constant dense<0.000000e+00> : vector<8x4xf32>
    %35 = tpu.matmul %30, %4, %cst_31 {dimension_numbers = #tpu.dot_dimension_numbers<[1], [0], [0], [1], [0, 0, 1, 1], [], []>} : vector<8x8xf32>, vector<8x4xf32>, vector<8x4xf32> -> vector<8x4xf32>
    %36 = vector.broadcast %5 : vector<1x4xf32> to vector<8x4xf32>
    %37 = arith.addf %35, %36 : vector<8x4xf32>
    %cst_32 = arith.constant 5.000000e-01 : f32
    %38 = vector.broadcast %cst_32 : f32 to vector<8x4xf32>
    %39 = arith.mulf %38, %37 : vector<8x4xf32>
    %cst_33 = arith.constant 0.707106769 : f32
    %40 = vector.broadcast %cst_33 : f32 to vector<8x4xf32>
    %41 = arith.mulf %37, %40 : vector<8x4xf32>
    %42 = math.erf %41 : vector<8x4xf32>
    %cst_34 = arith.constant 1.000000e+00 : f32
    %43 = vector.broadcast %cst_34 : f32 to vector<8x4xf32>
    %44 = arith.addf %43, %42 : vector<8x4xf32>
    %45 = arith.mulf %39, %44 : vector<8x4xf32>
    %cst_35 = arith.constant dense<0.000000e+00> : vector<8x4xf32>
    %46 = tpu.matmul %45, %6, %cst_35 {dimension_numbers = #tpu.dot_dimension_numbers<[1], [0], [0], [1], [0, 0, 1, 1], [], []>} : vector<8x4xf32>, vector<4x4xf32>, vector<8x4xf32> -> vector<8x4xf32>
    %47 = vector.broadcast %7 : vector<1x4xf32> to vector<8x4xf32>
    %48 = arith.addf %46, %47 : vector<8x4xf32>
    %c0_36 = arith.constant 0 : index
    %c0_37 = arith.constant 0 : index
    %c0_38 = arith.constant 0 : index
    %49 = vector.load %arg3[%c0_36, %c0_37, %c0_38] : memref<1x8x4xf32, #tpu.memory_space<vmem>>, vector<1x8x4xf32>
    %50 = vector.shape_cast %49 : vector<1x8x4xf32> to vector<8x4xf32>
    %51 = arith.addf %50, %48 : vector<8x4xf32>
    %52 = tpu.transpose %51, [1, 0] : vector<8x4xf32> -> vector<4x8xf32>
    %c0_39 = arith.constant 0 : index
    %c0_40 = arith.constant 0 : index
    %c0_41 = arith.constant 0 : index
    %53 = vector.load %arg14[%c0_39, %c0_40, %c0_41] : memref<1x4x8xf32, #tpu.memory_space<vmem>>, vector<1x4x8xf32>
    %54 = vector.shape_cast %53 : vector<1x4x8xf32> to vector<4x8xf32>
    %55 = vector.shape_cast %52 : vector<4x8xf32> to vector<1x4x8xf32>
    tpu.vector_store %arg14[%c0_39, %c0_40, %c0_41], %55 {strides = array<i32>} : memref<1x4x8xf32, #tpu.memory_space<vmem>>, vector<1x4x8xf32>,
    return
  }
  func.func @transform_0(%arg0: i32) -> (i32, i32, i32) {
    %c0_i32 = arith.constant 0 : i32
    %c0_i32_0 = arith.constant 0 : i32
    %c0_i32_1 = arith.constant 0 : i32
    return %arg0, %c0_i32, %c0_i32_0 : i32, i32, i32
  }
  func.func @transform_1(%arg0: i32) -> (i32, i32, i32) {
    %c0_i32 = arith.constant 0 : i32
    %c0_i32_0 = arith.constant 0 : i32
    %c0_i32_1 = arith.constant 0 : i32
    return %arg0, %c0_i32, %c0_i32_0 : i32, i32, i32
  }
  func.func @transform_2(%arg0: i32) -> (i32, i32, i32) {
    %c0_i32 = arith.constant 0 : i32
    %c0_i32_0 = arith.constant 0 : i32
    %c0_i32_1 = arith.constant 0 : i32
    return %arg0, %c0_i32, %c0_i32_0 : i32, i32, i32
  }
  func.func @transform_3(%arg0: i32) -> (i32, i32) {
    %c0_i32 = arith.constant 0 : i32
    %c0_i32_0 = arith.constant 0 : i32
    %c0_i32_1 = arith.constant 0 : i32
    return %c0_i32, %c0_i32_0 : i32, i32
  }
  func.func @transform_4(%arg0: i32) -> (i32, i32) {
    %c0_i32 = arith.constant 0 : i32
    %c0_i32_0 = arith.constant 0 : i32
    %c0_i32_1 = arith.constant 0 : i32
    return %c0_i32, %c0_i32_0 : i32, i32
  }
  func.func @transform_5(%arg0: i32) -> (i32, i32) {
    %c0_i32 = arith.constant 0 : i32
    %c0_i32_0 = arith.constant 0 : i32
    %c0_i32_1 = arith.constant 0 : i32
    return %c0_i32, %c0_i32_0 : i32, i32
  }
  func.func @transform_6(%arg0: i32) -> (i32, i32) {
    %c0_i32 = arith.constant 0 : i32
    %c0_i32_0 = arith.constant 0 : i32
    %c0_i32_1 = arith.constant 0 : i32
    return %c0_i32, %c0_i32_0 : i32, i32
  }
  func.func @transform_7(%arg0: i32) -> (i32, i32) {
    %c0_i32 = arith.constant 0 : i32
    %c0_i32_0 = arith.constant 0 : i32
    %c0_i32_1 = arith.constant 0 : i32
    return %c0_i32, %c0_i32_0 : i32, i32
  }
  func.func @transform_8(%arg0: i32) -> (i32, i32) {
    %c0_i32 = arith.constant 0 : i32
    %c0_i32_0 = arith.constant 0 : i32
    %c0_i32_1 = arith.constant 0 : i32
    return %c0_i32, %c0_i32_0 : i32, i32
  }
  func.func @transform_9(%arg0: i32) -> (i32, i32) {
    %c0_i32 = arith.constant 0 : i32
    %c0_i32_0 = arith.constant 0 : i32
    %c0_i32_1 = arith.constant 0 : i32
    return %c0_i32, %c0_i32_0 : i32, i32
  }
  func.func @transform_10(%arg0: i32) -> (i32, i32) {
    %c0_i32 = arith.constant 0 : i32
    %c0_i32_0 = arith.constant 0 : i32
    %c0_i32_1 = arith.constant 0 : i32
    return %c0_i32, %c0_i32_0 : i32, i32
  }
  func.func @transform_11(%arg0: i32) -> (i32, i32, i32) {
    %c0_i32 = arith.constant 0 : i32
    %c0_i32_0 = arith.constant 0 : i32
    %c0_i32_1 = arith.constant 0 : i32
    return %arg0, %c0_i32, %c0_i32_0 : i32, i32, i32
  }
  func.func @transform_12(%arg0: i32) -> (i32, i32, i32) {
    %c0_i32 = arith.constant 0 : i32
    %c0_i32_0 = arith.constant 0 : i32
    %c0_i32_1 = arith.constant 0 : i32
    return %arg0, %c0_i32, %c0_i32_0 : i32, i32, i32
  }
  func.func @transform_13(%arg0: i32) -> (i32, i32, i32) {
    %c0_i32 = arith.constant 0 : i32
    %c0_i32_0 = arith.constant 0 : i32
    %c0_i32_1 = arith.constant 0 : i32
    return %arg0, %c0_i32, %c0_i32_0 : i32, i32, i32
  }
}

</mosaic_0001>

<bundles_post_ra>
// kernel: tpu_custom_call.1
= control target key start
LH: loop header
LB: loop body
LE: loop exit
PB: predicated region body
PF: predicated region fallthrough
CT: control target
= control target key end

     0   :  { %s1587_s0 = inlined_call_operand.vmem [shape: f32[2,8,16], index: 0, kind: input, shape index: {}]   ;;  %s1588_s1 = inlined_call_operand.vmem [shape: f32[2,8,8], index: 1, kind: input, shape index: {}]   ;;  %s1589_s2 = inlined_call_operand.vmem [shape: f32[2,8,4], index: 2, kind: input, shape index: {}]   ;;  %s1590_s3 = inlined_call_operand.vmem [shape: f32[16,8], index: 3, kind: input, shape index: {}]   ;;  %s1591_s4 = inlined_call_operand.vmem [shape: f32[1,8], index: 4, kind: input, shape index: {}]   ;;  %s1592_s5 = inlined_call_operand.vmem [shape: f32[8,8], index: 5, kind: input, shape index: {}]   ;;  %s1593_s6 = inlined_call_operand.vmem [shape: f32[1,8], index: 6, kind: input, shape index: {}]   ;;  %s1594_s7 = inlined_call_operand.vmem [shape: f32[8,4], index: 7, kind: input, shape index: {}]   ;;  %s1595_s8 = inlined_call_operand.vmem [shape: f32[1,4], index: 8, kind: input, shape index: {}]   ;;  %s1596_s9 = inlined_call_operand.vmem [shape: f32[4,4], index: 9, kind: input, shape index: {}]   ;;  %s1597_s10 = inlined_call_operand.vmem [shape: f32[1,4], index: 10, kind: input, shape index: {}]   ;;  %s1598_s11 = inlined_call_operand.vmem [shape: f32[2,16,8], index: 11, kind: output, shape index: {0}]   ;;  %s1599_s12 = inlined_call_operand.hbm [shape: f32[2,8,8], index: 12, kind: output, shape index: {1}]   ;;  %s1600_s13 = inlined_call_operand.hbm [shape: f32[2,4,8], index: 13, kind: output, shape index: {2}]  }
   0x1   :  { %1601 = sst [smem:[#allocation8_spill]] %s1587_s0 }
   0x2   :  { %1602 = sst [smem:[#allocation9_spill]] %s1588_s1 }
   0x3   :  { %1603 = sst [smem:[#allocation10_spill]] %s1590_s3 }
   0x4   :  { %1604 = sst [smem:[#allocation11_spill]] %s1591_s4 }
   0x5   :  { %1605 = sst [smem:[#allocation12_spill]] %s1592_s5 }
   0x6   :  { %19 = vsyncpa [#allocation3], 0 }
   0x7   :  { %21 = vsyncpa [#allocation3 + $0x1], 0 }
   0x8   :  { %22 = vsyncpa [#allocation5], 0 }
   0x9   :  { %24 = vsyncpa [#allocation5 + $0x1], 0  ;;  %s1404_s25 = smov 0   ;;  %s1406_s26 = smov 0  }
   0xa   :  { %s1408_s27 = smov 0   ;;  %s1410_s28 = smov 0  }
   0xb LB: > { %s1425_s29 = sadd.s32 4294967295, %s1327_s28   ;;  %s1121_s30 = sadd.s32 4294967294, %s1327_s28   ;;  %s1327_s28 = sphi %s1410_s28, %s1616_s28   ;;  %s1323_s27 = sphi %s1408_s27, %s1615_s27   ;;  %s1319_s26 = sphi %s1406_s26, %s1614_s26   ;;  %s1315_s25 = sphi %s1404_s25, %s1613_s25  }
   0xc   : > { %s1429_s14 = sadd.s32 1, %s1327_s28   ;;  %s309_s15 = sadd.s32 1, %s1323_s27 }
   0xd   : > { %s306_s16 = ssub.s32 %s1327_s28, %s1429_s14  ;;  %p319_p0 = scmp.ne.s32.totalorder %s1323_s27, %s1319_s26 }
   0xe   : > { %p307_p1 = scmp.eq.s32.totalorder %s306_s16, 0  ;;  %p320_p2 = scmp.eq.s32.totalorder %s1425_s29, 1 }
   0xf   : > { %p325_p3 = scmp.ne.s32.totalorder %s1319_s26, %s1315_s25  ;;  %p326_p4 = scmp.eq.s32.totalorder %s1121_s30, 1 }
  0x10   : > { %s1440_s17 = scalar_select %p307_p1, %s1323_s27, %s309_s15  }
  0x11   : > { %p1442_p5 = por %p320_p2, %p319_p0  ;;  %p1446_p6 = por %p326_p4, %p325_p3 }
  0x12   : > { %p1124_p7 = scmp.ge.s32.totalorder %s1327_s28, 1  ;;  %p415_p8 = scmp.lt.s32.totalorder %s1327_s28, 3 }
  0x14   : > { %p416_p9 = pnand %p1124_p7, %p415_p8 }
  0x15   : > { %s1608_s3 = sld [smem:[#allocation10_spill]] (!%p416_p9)  ;;  %p476_p10 = scmp.lt.s32.totalorder (!%p416_p9), %s1425_s29, 1  ;;  %v1329_v2 = vmov (!%p416_p9), 0.0|0.0   ;;  %vm1330_vm0 = vmmov (!%p416_p9), 0   ;;  %v1331_v4 = vmov (!%p416_p9), 0.0   ;;  %vm544_vm1 = vcmask (!%p416_p9), 130048  }
  0x16   : > { %419 = sbr.rel (%p416_p9) target bundleno = 1071 (0x42f), region = 64  ;;  %1179 = vmatprep.subr.bf16.mxu0 (!%p416_p9), %v1329_v2  ;;  %1161 = vmatprep.mubr.msk.f32.mxu0 (!%p416_p9), %vm1330_vm0, %v1331_v4  ;;  %s1609_s0 = sld [smem:[#allocation8_spill]] (!%p416_p9)  ;;  %vm535_vm2 = vcmask (!%p416_p9), 64512   ;;  %v498_v16 = vld [vmem:[%s1594_s7] sm:$0xff] (!%p416_p9)  ;;  %vm831_vm3 = vcmask (!%p416_p9), 1043456   ;;  %vm827_vm4 = vcmask (!%p416_p9), 31744  }
  0x17   : > { %1164 = vmatprep.subr.mxu1 (!%p416_p9), %v1331_v4  ;;  %1166 = vmatprep.mubr.msk.f32.mxu1 (!%p416_p9), %vm1330_vm0, %v1331_v4  ;;  %s1610_s5 = sld [smem:[#allocation12_spill]] (!%p416_p9)  ;;  %s1611_s4 = sld [smem:[#allocation11_spill]] (!%p416_p9)  ;;  %v1134_v17 = vld [vmem:[%s1593_s6] ss:$0 sm:$0xff] (!%p416_p9) }
  0x18   : > { %s1612_s1 = sld [smem:[#allocation9_spill]] (!%p416_p9)  ;;  %v500_v23 = vld [vmem:[%s1596_s9] sm:$0xf] (!%p416_p9) }
  0x19   : > { %v1136_v24 = vld [vmem:[%s1595_s8] ss:$0 sm:$0xff] (!%p416_p9) }
  0x1a   : > { %v1138_v36 = vld [vmem:[%s1597_s10] ss:$0 sm:$0xff] (!%p416_p9) }
  0x1b   : > { %v493_v0 = vld [vmem:[%s1608_s3] sm:$0xff] (!%p416_p9)  ;;  %v494_v1 = vld [vmem:[%s1608_s3 + $0x8] sm:$0xff] (!%p416_p9)  ;;  %s1332_s3 = smov (!%p416_p9), [#allocation2]  }
  0x1c   : > { %v1180_v3 = vpack.c.bf16 (!%p416_p9), %v494_v1, %v493_v0 }
  0x1d   : > { %s1461_s24 = scalar_select %p476_p10, %s1425_s29, 1  ;;  %v496_v6 = vld [vmem:[%s1610_s5] sm:$0xff] }
  0x1e   : > { %1181 = vmatpush3.bf16.msra.mxu0 %v1180_v3  ;;  %1165 = vmatpush3.msra.mxu1 %v496_v6  ;;  %v1132_v7 = vld [vmem:[%s1611_s4] ss:$0 sm:$0xff] }
  0x1f   : > { %s1465_s30 = sshll.u32 %s1461_s24, 3  ;;  %1174 = vmatprep.subr.mxu0 %v1331_v4  ;;  %1169 = vmatprep.subr.mxu1 %v1331_v4 }
  0x20   : > { %s479_s20 = scalar_lea.vmem %s1609_s0, %s1465_s30  ;;  %s483_s21 = scalar_lea.vmem %s1612_s1, %s1465_s30 }
  0x21   : > { %v502_v5 = vld [vmem:[%s479_s20] sm:$0xff]  ;;  %s1147_s0 = sshll.u32 %s1461_s24, 4  ;;  %s1499_s20 = sand.u32 1, %s1319_s26  }
  0x22   : > { %1162 = vmatmul.mubr.msk.f32.vlgmr.msra.gmra.mrb[0].mxu0 %vm544_vm1, %v502_v5  ;;  %503 = vxpose.xlu0.b32.start.end [1/1] (short) (narrow) %v502_v5, 16  ;;  %v702_v19 = vld [vmem:[%s483_s21] sm:$0xff]  ;;  %s492_s23 = scalar_lea.vmem %s1598_s11, %s1147_s0  ;;  %s1125_s15 = sshll.u32 %s1499_s20, 3 }
  0x23   : > { %1176 = vmatprep.mubr.msk.f32.mxu0 %vm1330_vm0, %v1331_v4  ;;  %1175 = vmatpush3.msk.msra.mxu0 %vm831_vm3, %v500_v23  ;;  %s468_s16 = scalar_lea.vmem [#allocation2], %s1125_s15  ;;  %s487_s1 = scalar_lea.vmem %s1589_s2, %s1465_s30 }
  0x24   : > { %v905_v38 = vld [vmem:[%s487_s1] sm:$0xff]  ;;  %s1143_s0 = sshll.u32 %s1425_s29, 7  ;;  %s947_s24 = scalar_lea.sflag [#allocation3], %s1499_s20 }
  0x25   : > { %s1519_s5 = scalar_lea.hbm %s1599_s12, %s1143_s0  ;;  %s1237_s1 = sshll.u32 %s1332_s3, 4  ;;  %s1238_s1 = int_to_ptr.vmem [resolvable:$false] %s1237_s1 }
  0x26   : > { %s1239_s21 = scalar_lea.vmem %s1238_s1, 256 }
  0xa2   : > { %v519_v33 = vpop.trf.xlu0 }
  0xa3   : > { %536 = vst.msk [vmem:[%s492_s23] sm:$0xff] %vm535_vm2, %v519_v33 }
  0xa6   : > { %v520_v34 = vpop.trf.xlu0 }
  0xa7   : > { %537 = vst.msk [vmem:[%s492_s23 + $0x8] sm:$0xff] %vm535_vm2, %v520_v34  ;;  %s968_s23 = sshll.u32 %s468_s16, 4  ;;  %s969_s23 = int_to_ptr.vmem [resolvable:$true] %s968_s23 }
  0xa8   : > { %s1233_s30 = scalar_lea.vmem %s969_s23, 128  ;;  %p1240_p0 = scmp.lt.s32.totalorder %s969_s23, %s1238_s1 }
  0xa9   : > { %p1234_p11 = scmp.ne.s32.totalorder %s969_s23, %s1233_s30  ;;  %p1241_p1 = scmp.lt.s32.totalorder %s1239_s21, %s1233_s30 }
  0xab   : > { %p1235_p12 = pnand %p1234_p11, %p1442_p5  ;;  %p1242_p2 = por %p1241_p1, %p1240_p0 }
  0xad   : > { %p1236_p13 = pneg %p1235_p12 }
  0xaf   : > { %p1243_p3 = pnand %p1242_p2, %p1236_p13 }
  0xf5   : > { %v614_v8 = vpop.f32.mrb[0].mxu0 }
  0xf6   : > { %v615_v9 = vadd.f32 %v1132_v7, %v614_v8  ;;  %v1163_v10 = vpop.f32.mrb[1].mxu0 }
  0xf8   : > { %v619_v11 = vmul.f32 0.70710677, %v615_v9  ;;  %v618_v13 = vmul.f32 0.5, %v615_v9 }
  0xfa   : > { %1229 = verf.f32 %v619_v11 }
 0x104   : > { %v1230_v12 = vpop.eup %1229 }
 0x105   : > { %v621_v14 = vadd.f32 1.0, %v1230_v12 }
 0x107   : > { %v622_v15 = vmul.f32 %v621_v14, %v618_v13 }
 0x109   : > { %1167 = vmatmul.mubr.msk.f32.vlgmr.msra.gmra.mrb[0].mxu1 %vm535_vm2, %v622_v15 }
 0x10a   : > { %1171 = vmatprep.mubr.msk.f32.mxu1 %vm1330_vm0, %v1331_v4  ;;  %1170 = vmatpush3.msra.mxu1 %v498_v16 }
 0x1dc   : > { %v698_v18 = vpop.f32.mrb[0].mxu1 }
 0x1dd   : > { %v699_v20 = vadd.f32 %v1134_v17, %v698_v18  ;;  %v1168_v21 = vpop.f32.mrb[1].mxu1 }
 0x1df   : > { %v703_v22 = vadd.f32 %v702_v19, %v699_v20 }
 0x1e1   : > { %704 = vxpose.xlu0.b32.start.end [1/1] (short) (narrow) %v703_v22, 8  ;;  %1172 = vmatmul.mubr.msk.f32.vlgmr.msra.gmra.mrb[2].mxu1 %vm535_vm2, %v703_v22 }
 0x261   : > { %v720_v35 = vpop.trf.xlu0 }
 0x262   : > { %736 = vst.msk [vmem:[%s468_s16] sm:$0xff] %vm535_vm2, %v720_v35 }
 0x2b4   : > { %v812_v25 = vpop.f32.mrb[2].mxu1 }
 0x2b5   : > { %v813_v26 = vadd.f32 %v1136_v24, %v812_v25  ;;  %v1173_v27 = vpop.f32.mrb[3].mxu1 }
 0x2b7   : > { %v817_v28 = vmul.f32 0.70710677, %v813_v26  ;;  %v816_v30 = vmul.f32 0.5, %v813_v26 }
 0x2b9   : > { %1231 = verf.f32 %v817_v28 }
 0x2c3   : > { %v1232_v29 = vpop.eup %1231 }
 0x2c4   : > { %v819_v31 = vadd.f32 1.0, %v1232_v29 }
 0x2c6   : > { %v820_v32 = vmul.f32 %v819_v31, %v816_v30 }
 0x2c8   : > { %1177 = vmatmul.mubr.msk.f32.vlgmr.msra.gmra.mrb[2].mxu0 %vm827_vm4, %v820_v32 }
 0x39b   : > { %v901_v37 = vpop.f32.mrb[2].mxu0 }
 0x39c   : > { %v902_v39 = vadd.f32 %v1138_v36, %v901_v37  ;;  %v1178_v40 = vpop.f32.mrb[3].mxu0 }
 0x39e   : > { %v906_v41 = vadd.f32 %v905_v38, %v902_v39 }
 0x3a0   : > { %907 = vxpose.xlu1.b32.start.end [1/1] (short) (narrow) %v906_v41, 8 }
 0x3a1   : > { %1246 = shalt.err (!%p1243_p3)
}
 0x3a2   : > { %s1247_s4 = scalar_lea.hbm %s1519_s5, 128  ;;  %s1251_s0 = scalar_lea.hbm %s1599_s12, 256 }
 0x3a3   : > { %p1248_p4 = scmp.ne.s32.totalorder %s1519_s5, %s1247_s4  ;;  %p1252_p9 = scmp.lt.u32.totalorder %s1519_s5, %s1599_s12 }
 0x3a4   : > { %p1253_p10 = scmp.lt.u32.totalorder %s1251_s0, %s1247_s4  ;;  %p1255_p12 = scmp.lt.u32.totalorder %s1247_s4, %s1519_s5 }
 0x3a5   : > { %p1249_p7 = pnand %p1248_p4, %p1442_p5 }
 0x3a6   : > { %p1254_p11 = por %p1253_p10, %p1252_p9 }
 0x3a7   : > { %p1250_p8 = pneg %p1249_p7 }
 0x3a8   : > { %p1256_p13 = por %p1255_p12, %p1254_p11 }
 0x3aa   : > { %p1257_p0 = pnand %p1256_p13, %p1250_p8 }
 0x3ac   : > { %1260 = shalt.err (!%p1257_p0)
}
 0x3ad   : > { %1182 = dma.vmem_to_hbm [thread:$0]  (%p1442_p5), %s969_s23, 128, %s1519_s5, %s947_s24   ;;  %vm939_vm5 = vcmask 60416  }
 0x3ae   : > { %s1126_s30 = sshll.u32 %s1499_s20, 2  ;;  %s1144_s1 = sshll.u32 %s1425_s29, 6 }
 0x3af   : > { %s475_s21 = scalar_lea.vmem [#allocation4], %s1126_s30  ;;  %s1544_s4 = scalar_lea.hbm %s1600_s13, %s1144_s1 }
 0x3b0   : > { %s981_s16 = sshll.u32 %s475_s21, 4  ;;  %s952_s15 = scalar_lea.sflag [#allocation5], %s1499_s20  ;;  %s1546_s16 = int_to_ptr.vmem [resolvable:$true] %s981_s16 }
 0x3b1   : > { %s1261_s3 = scalar_lea.vmem %s1546_s16, 64  ;;  %s1333_s5 = smov [#allocation4]  }
 0x3b2   : > { %p1262_p1 = scmp.ne.s32.totalorder %s1546_s16, %s1261_s3  ;;  %s1265_s29 = sshll.u32 %s1333_s5, 4  ;;  %s1266_s29 = int_to_ptr.vmem [resolvable:$false] %s1265_s29 }
 0x3b3   : > { %s1267_s23 = scalar_lea.vmem %s1266_s29, 128  ;;  %p1268_p4 = scmp.lt.s32.totalorder %s1546_s16, %s1266_s29 }
 0x3b4   : > { %p1263_p2 = pnand %p1262_p1, %p1442_p5  ;;  %p1269_p7 = scmp.lt.s32.totalorder %s1267_s23, %s1261_s3 }
 0x3b6   : > { %p1264_p3 = pneg %p1263_p2  ;;  %p1270_p8 = por %p1269_p7, %p1268_p4 }
 0x3b8   : > { %p1271_p9 = pnand %p1270_p8, %p1264_p3 }
 0x420   : > { %v923_v42 = vpop.trf.xlu1 }
 0x421   : > { %940 = vst.msk [vmem:[%s475_s21] sm:$0xf] %vm939_vm5, %v923_v42 }
 0x422   : > { %1274 = shalt.err (!%p1271_p9)
}
 0x423   : > { %s1275_s20 = scalar_lea.hbm %s1544_s4, 64  ;;  %s1279_s1 = scalar_lea.hbm %s1600_s13, 128 }
 0x424   : > { %p1276_p10 = scmp.ne.s32.totalorder %s1544_s4, %s1275_s20  ;;  %p1280_p13 = scmp.lt.u32.totalorder %s1544_s4, %s1600_s13 }
 0x425   : > { %p1281_p0 = scmp.lt.u32.totalorder %s1279_s1, %s1275_s20  ;;  %p1283_p2 = scmp.lt.u32.totalorder %s1275_s20, %s1544_s4 }
 0x426   : > { %p1277_p11 = pnand %p1276_p10, %p1442_p5 }
 0x427   : > { %p1282_p1 = por %p1281_p0, %p1280_p13 }
 0x428   : > { %p1278_p12 = pneg %p1277_p11 }
 0x429   : > { %p1284_p3 = por %p1283_p2, %p1282_p1 }
 0x42b   : > { %p1285_p4 = pnand %p1284_p3, %p1278_p12 }
 0x42d   : > { %1288 = shalt.err (!%p1285_p4)
}
 0x42e   : > { %1183 = dma.vmem_to_hbm [thread:$0]  (%p1442_p5), %s1546_s16, 64, %s1544_s4, %s952_s15  }
 0x42f PF: > { %p1193_p7 = scmp.ge.s32.totalorder %s1327_s28, 2  ;;  %s1001_s0 = sand.u32 1, %s1315_s25  }
 0x430   : > { %s1002_s3 = scalar_lea.sflag [#allocation3], %s1001_s0 }
 0x431   : > { %p1187_p8 = pnand %p1193_p7, %p1446_p6 }
 0x433   : > { %1306 = dma.done.wait (!%p1187_p8), %s1002_s3, 128  }
 0x434   : > { %1308 = vsyncadd (!%p1187_p8), %s1002_s3, 4294967168  ;;  %s1011_s5 = scalar_lea.sflag [#allocation5], %s1001_s0 }
 0x435   : > { %1310 = dma.done.wait (!%p1187_p8), %s1011_s5, 64  }
 0x436   : > { %1312 = vsyncadd (!%p1187_p8), %s1011_s5, 4294967232  ;;  %p27_p5 = scmp.ge.s32.totalorder %s1429_s14, 4   ;;  %s1613_s25 = smov %s1319_s26 }
 0x437   : > { %s1614_s26 = smov %s1323_s27  ;;  %s1615_s27 = smov %s1440_s17 }
 0x438   : > { %s1616_s28 = smov %s1429_s14  ;;  %29 = sbr.rel (!%p27_p5) target bundleno = 11 (0xb), region = 134 }
 0x43f   :  { %1016 = vsyncpa [#allocation3], 1 }
 0x440   :  { %1018 = vsyncpa [#allocation3 + $0x1], 1 }
 0x441   :  { %1019 = vsyncpa [#allocation5], 1 }
 0x442   :  { %1021 = vsyncpa [#allocation5 + $0x1], 1 }

</bundles_post_ra>
